<compile_context>
chip_gen: v6e
topology: v6e:2x2x1
jax: 0.10.0
libtpu: 0.0.40
codegen_flags: <defaults>
</compile_context>

<pallas_src>
import math
from functools import partial

import jax
import jax.numpy as jnp
from jax import lax
from jax.experimental import pallas as pl
from jax.experimental.pallas import tpu as pltpu

_INV_SQRT2 = 1.0 / math.sqrt(2.0)
_LN_EPS = 1e-5
_FUSED_VMEM_BUDGET = 24 * 1024 * 1024


def _gelu(y):
    # exact (erf-based) GELU, matching the reference gelu()
    return 0.5 * y * (1.0 + lax.erf(y * _INV_SQRT2))


def _layernorm(y, gamma, beta, eps):
    mean = jnp.mean(y, axis=-1, keepdims=True)
    var = jnp.mean(jnp.square(y - mean), axis=-1, keepdims=True)
    return (y - mean) * lax.rsqrt(var + eps) * gamma + beta


def _block_rows_target():
    """Per-generation batch-tile target (v5e MXU is 128x128; v6e/v7x 256x256)."""
    try:
        kind = jax.devices()[0].device_kind.lower()
    except Exception:
        kind = ""
    if "v5 lite" in kind or "v5lite" in kind or "v5e" in kind:
        return 128
    return 256


def _pick_block_rows(batch, target):
    if batch <= target:
        return batch              # full-dim block: always legal
    return max(8, (target // 8) * 8)


def _pick_block_k(d_in, target=512):
    if d_in <= target:
        return d_in
    for bk in (512, 384, 256, 128):
        if bk <= target and d_in % bk == 0:
            return bk
    return d_in                   # fall back to full K (stays correct)


def _maybe_vmem_limit(est_bytes):
    # Default scoped VMEM is 16-32 MiB depending on generation; raise it only
    # when needed and stay under v7x's 64 MiB physical VMEM per TensorCore.
    if est_bytes <= 24 * 1024 * 1024:
        return None
    return min(int(est_bytes * 1.25), 60 * 1024 * 1024)


# ---------------------------------------------------------------------------
# Fully fused MLP: one pallas_call, grid over batch tiles only.  All weights
# stay resident in VMEM and intermediate activations never touch HBM.
# Weights are (D_in, D_out), so each matmul is a plain (M,K) x (K,N).
# ---------------------------------------------------------------------------
def _fused_mlp_kernel(*refs, n_layers, has_norm, eps, act_dtype):
    x_ref = refs[0]
    w_refs = refs[1:1 + n_layers]
    n_gb = 2 * (n_layers - 1) if has_norm else 0
    gb_refs = refs[1 + n_layers:1 + n_layers + n_gb]
    o_ref = refs[1 + n_layers + n_gb]

    h = x_ref[...]
    for l in range(n_layers):
        y = jnp.dot(h, w_refs[l][...], preferred_element_type=jnp.float32)
        if l < n_layers - 1:
            y = _gelu(y)
            if has_norm:
                g = gb_refs[2 * l][...].astype(jnp.float32)
                b = gb_refs[2 * l + 1][...].astype(jnp.float32)
                y = _layernorm(y, g, b, eps)
            # keep low-precision MXU operands if activations are bf16
            h = y.astype(act_dtype)
        else:
            h = y
    o_ref[...] = h.astype(o_ref.dtype)


def fused_mlp(x, weights, norms, *, block_rows, eps=_LN_EPS, vmem_limit=None):
    batch, d_in = x.shape
    n_layers = len(weights)
    has_norm = bool(norms)
    d_out = weights[-1].shape[1]
    grid = (pl.cdiv(batch, block_rows),)

    in_specs = [pl.BlockSpec((block_rows, d_in), lambda i: (i, 0))]
    args = [x]
    for w in weights:
        in_specs.append(pl.BlockSpec(w.shape, lambda i: (0, 0)))
        args.append(w)
    if has_norm:
        for g, b in norms:
            in_specs.append(pl.BlockSpec(g.shape, lambda i: (0, 0)))
            in_specs.append(pl.BlockSpec(b.shape, lambda i: (0, 0)))
            args.extend([g, b])

    cp = dict(dimension_semantics=("parallel",))
    if vmem_limit is not None:
        cp["vmem_limit_bytes"] = vmem_limit

    kernel = partial(_fused_mlp_kernel, n_layers=n_layers, has_norm=has_norm,
                     eps=eps, act_dtype=x.dtype)
    return pl.pallas_call(
        kernel,
        out_shape=jax.ShapeDtypeStruct((batch, d_out), x.dtype),
        grid_spec=pltpu.PrefetchScalarGridSpec(
            num_scalar_prefetch=0,
            grid=grid,
            in_specs=in_specs,
            out_specs=pl.BlockSpec((block_rows, d_out), lambda i: (i, 0)),
        ),
        compiler_params=pltpu.CompilerParams(**cp),
    )(*args)


# ---------------------------------------------------------------------------
# Per-layer fallback (for layers too large to keep every weight resident):
# grid = (row tiles [parallel], K tiles [arbitrary]) with an f32 accumulator.
# ---------------------------------------------------------------------------
def _layer_kernel_norm(x_ref, w_ref, g_ref, b_ref, o_ref, acc_ref, *, eps):
    k = pl.program_id(1)

    @pl.when(k == 0)
    def _():
        acc_ref[...] = jnp.zeros_like(acc_ref)

    acc_ref[...] += jnp.dot(x_ref[...], w_ref[...],
                            preferred_element_type=jnp.float32)

    @pl.when(k == pl.num_programs(1) - 1)
    def _():
        y = _gelu(acc_ref[...])
        y = _layernorm(y, g_ref[...].astype(jnp.float32),
                       b_ref[...].astype(jnp.float32), eps)
        o_ref[...] = y.astype(o_ref.dtype)


def _layer_kernel_plain(x_ref, w_ref, o_ref, acc_ref, *, apply_gelu):
    k = pl.program_id(1)

    @pl.when(k == 0)
    def _():
        acc_ref[...] = jnp.zeros_like(acc_ref)

    acc_ref[...] += jnp.dot(x_ref[...], w_ref[...],
                            preferred_element_type=jnp.float32)

    @pl.when(k == pl.num_programs(1) - 1)
    def _():
        y = acc_ref[...]
        if apply_gelu:
            y = _gelu(y)
        o_ref[...] = y.astype(o_ref.dtype)


def _layer_kernel_norm_single(x_ref, w_ref, g_ref, b_ref, o_ref, *, eps):
    y = jnp.dot(x_ref[...], w_ref[...], preferred_element_type=jnp.float32)
    y = _gelu(y)
    y = _layernorm(y, g_ref[...].astype(jnp.float32),
                   b_ref[...].astype(jnp.float32), eps)
    o_ref[...] = y.astype(o_ref.dtype)


def _layer_kernel_plain_single(x_ref, w_ref, o_ref, *, apply_gelu):
    y = jnp.dot(x_ref[...], w_ref[...], preferred_element_type=jnp.float32)
    if apply_gelu:
        y = _gelu(y)
    o_ref[...] = y.astype(o_ref.dtype)


def mlp_layer(x, w, gamma=None, beta=None, *, block_rows, apply_gelu=False,
              eps=_LN_EPS):
    batch, d_in = x.shape
    d_out = w.shape[1]
    block_k = _pick_block_k(d_in)
    n_k = d_in // block_k
    single_k = (n_k == 1)

    itemsize = x.dtype.itemsize
    est = (2 * (block_rows * block_k + block_k * d_out) * itemsize
           + 2 * block_rows * d_out * itemsize
           + (0 if single_k else block_rows * d_out * 4))
    vmem_limit = _maybe_vmem_limit(est)

    if single_k:
        grid = (pl.cdiv(batch, block_rows),)
        x_spec = pl.BlockSpec((block_rows, d_in), lambda i: (i, 0))
        w_spec = pl.BlockSpec((d_in, d_out), lambda i: (0, 0))
        gb_spec = pl.BlockSpec((1, d_out), lambda i: (0, 0))
        out_spec = pl.BlockSpec((block_rows, d_out), lambda i: (i, 0))
        scratch = []
        semantics = ("parallel",)
        if gamma is not None:
            kernel = partial(_layer_kernel_norm_single, eps=eps)
            in_specs = [x_spec, w_spec, gb_spec, gb_spec]
            args = (x, w, gamma, beta)
        else:
            kernel = partial(_layer_kernel_plain_single, apply_gelu=apply_gelu)
            in_specs = [x_spec, w_spec]
            args = (x, w)
    else:
        grid = (pl.cdiv(batch, block_rows), n_k)
        x_spec = pl.BlockSpec((block_rows, block_k), lambda i, k: (i, k))
        w_spec = pl.BlockSpec((block_k, d_out), lambda i, k: (k, 0))
        gb_spec = pl.BlockSpec((1, d_out), lambda i, k: (0, 0))
        out_spec = pl.BlockSpec((block_rows, d_out), lambda i, k: (i, 0))
        scratch = [pltpu.VMEM((block_rows, d_out), jnp.float32)]
        semantics = ("parallel", "arbitrary")
        if gamma is not None:
            kernel = partial(_layer_kernel_norm, eps=eps)
            in_specs = [x_spec, w_spec, gb_spec, gb_spec]
            args = (x, w, gamma, beta)
        else:
            kernel = partial(_layer_kernel_plain, apply_gelu=apply_gelu)
            in_specs = [x_spec, w_spec]
            args = (x, w)

    cp = dict(dimension_semantics=semantics)
    if vmem_limit is not None:
        cp["vmem_limit_bytes"] = vmem_limit

    return pl.pallas_call(
        kernel,
        out_shape=jax.ShapeDtypeStruct((batch, d_out), x.dtype),
        grid_spec=pltpu.PrefetchScalarGridSpec(
            num_scalar_prefetch=0,
            grid=grid,
            in_specs=in_specs,
            out_specs=out_spec,
            scratch_shapes=scratch,
        ),
        compiler_params=pltpu.CompilerParams(**cp),
    )(*args)


# ---------------------------------------------------------------------------
# Module wrapper
# ---------------------------------------------------------------------------
class MLPPallas:
    """Pallas equivalent of the PyTorch MLP module (bias=False, eval mode)."""

    def __init__(self, input_sizes, dropout_prob=0.2, bias=False,
                 key=None, dtype=jnp.float32):
        assert not bias, "reference module is constructed with bias=False"
        self.input_sizes = tuple(input_sizes)
        self.dropout_prob = dropout_prob
        key = jax.random.PRNGKey(0) if key is None else key

        # nn.Linear default init: U(-1/sqrt(fan_in), 1/sqrt(fan_in)).
        # Stored pre-transposed as (D_in, D_out) so kernels do (M,K) x (K,N).
        self.weights = []
        for i in range(1, len(input_sizes)):
            fan_in = input_sizes[i - 1]
            key, sub = jax.random.split(key)
            bound = 1.0 / math.sqrt(fan_in)
            w = jax.random.uniform(sub, (fan_in, input_sizes[i]), dtype=dtype,
                                   minval=-bound, maxval=bound)
            self.weights.append(w)

        # LayerNorm params for hidden layers (default gamma=1, beta=0).
        self.norms = []
        if len(input_sizes) > 2:
            for i in range(1, len(input_sizes) - 1):
                self.norms.append((jnp.ones((1, input_sizes[i]), dtype),
                                   jnp.zeros((1, input_sizes[i]), dtype)))

    def _fused_vmem_estimate(self, x, block_rows):
        itemsize = x.dtype.itemsize
        widths = [x.shape[1]] + [w.shape[1] for w in self.weights]
        w_bytes = sum(int(w.size) * w.dtype.itemsize for w in self.weights)
        gb_bytes = sum(int(g.size) * g.dtype.itemsize +
                       int(b.size) * b.dtype.itemsize for g, b in self.norms)
        act_bytes = block_rows * (widths[0] + widths[-1]) * itemsize
        inter_bytes = block_rows * max(widths) * 4      # f32 intermediates
        # BlockSpec-managed blocks are double-buffered by default.
        return 2 * (w_bytes + gb_bytes + act_bytes) + 2 * inter_bytes

    def __call__(self, x, use_fused=None):
        # TODO(synk): Dropout is identity (eval-mode semantics); training-mode
        # stochastic dropout would need pltpu.prng_* inside the kernels.
        block_rows = _pick_block_rows(x.shape[0], _block_rows_target())
        est = self._fused_vmem_estimate(x, block_rows)
        if use_fused is None:
            use_fused = est <= _FUSED_VMEM_BUDGET

        if use_fused:
            return fused_mlp(x, self.weights, self.norms,
                             block_rows=block_rows,
                             vmem_limit=_maybe_vmem_limit(est))

        # Per-layer path for large layers (weights streamed / K-tiled).
        n_layers = len(self.weights)
        for i, w in enumerate(self.weights):
            is_last = (i == n_layers - 1)
            if (not is_last) and self.norms:
                gamma, beta = self.norms[i]
                x = mlp_layer(x, w, gamma, beta, block_rows=block_rows)
            else:
                x = mlp_layer(x, w, block_rows=block_rows,
                              apply_gelu=not is_last)
        return x


def _reference_mlp(x, model):
    """Pure-JAX reference for a sanity check (weights already (D_in, D_out))."""
    n_layers = len(model.weights)
    for i, w in enumerate(model.weights):
        x = x @ w
        if i < n_layers - 1:
            x = 0.5 * x * (1.0 + lax.erf(x * _INV_SQRT2))
            if model.norms:
                g, b = model.norms[i]
                mean = jnp.mean(x, axis=-1, keepdims=True)
                var = jnp.mean((x - mean) ** 2, axis=-1, keepdims=True)
                x = (x - mean) * lax.rsqrt(var + _LN_EPS) * g + b
    return x


if __name__ == "__main__":
    key = jax.random.PRNGKey(0)
    input_sizes = (32, 64, 48, 16)   # three Linear layers, two hidden LayerNorms
    batch = 8

    k_x, k_p = jax.random.split(key)
    x = jax.random.normal(k_x, (batch, input_sizes[0]), dtype=jnp.float32)

    model = MLPPallas(input_sizes, dropout_prob=0.2, bias=False, key=k_p)

    ref = _reference_mlp(x, model)

    out_fused = jax.block_until_ready(model(x, use_fused=True))
    out_layer = jax.block_until_ready(model(x, use_fused=False))

    assert out_fused.shape == (batch, input_sizes[-1])
    assert out_layer.shape == (batch, input_sizes[-1])
    assert jnp.allclose(out_fused, ref, atol=1e-4, rtol=1e-4)
    assert jnp.allclose(out_layer, ref, atol=1e-4, rtol=1e-4)

    print("KERNEL_OK")
</pallas_src>

<mosaic_0001>
module attributes {stable_mosaic.version = 11 : i64} {
  func.func @_fused_mlp_kernel(%arg0: i32, %arg1: memref<8x32xf32, #tpu.memory_space<vmem>>, %arg2: memref<32x64xf32, #tpu.memory_space<vmem>>, %arg3: memref<64x48xf32, #tpu.memory_space<vmem>>, %arg4: memref<48x16xf32, #tpu.memory_space<vmem>>, %arg5: memref<1x64xf32, #tpu.memory_space<vmem>>, %arg6: memref<1x64xf32, #tpu.memory_space<vmem>>, %arg7: memref<1x48xf32, #tpu.memory_space<vmem>>, %arg8: memref<1x48xf32, #tpu.memory_space<vmem>>, %arg9: memref<8x16xf32, #tpu.memory_space<vmem>>) attributes {dimension_semantics = [#tpu.dimension_semantics<parallel>], iteration_bounds = array<i64: 1>, scalar_prefetch = 0 : i64, scratch_operands = 0 : i64, tpu.core_type = #tpu.core_type<tc>, window_params = [{transform_indices = @transform_0, window_bounds = array<i64: 8, 32>}, {pipeline_mode = #tpu.pipeline_mode<synchronous>, transform_indices = @transform_1, window_bounds = array<i64: 32, 64>}, {pipeline_mode = #tpu.pipeline_mode<synchronous>, transform_indices = @transform_2, window_bounds = array<i64: 64, 48>}, {pipeline_mode = #tpu.pipeline_mode<synchronous>, transform_indices = @transform_3, window_bounds = array<i64: 48, 16>}, {pipeline_mode = #tpu.pipeline_mode<synchronous>, transform_indices = @transform_4, window_bounds = array<i64: 1, 64>}, {pipeline_mode = #tpu.pipeline_mode<synchronous>, transform_indices = @transform_5, window_bounds = array<i64: 1, 64>}, {pipeline_mode = #tpu.pipeline_mode<synchronous>, transform_indices = @transform_6, window_bounds = array<i64: 1, 48>}, {pipeline_mode = #tpu.pipeline_mode<synchronous>, transform_indices = @transform_7, window_bounds = array<i64: 1, 48>}, {transform_indices = @transform_8, window_bounds = array<i64: 8, 16>}]} {
    %c0 = arith.constant 0 : index
    %c0_0 = arith.constant 0 : index
    %0 = vector.load %arg1[%c0, %c0_0] : memref<8x32xf32, #tpu.memory_space<vmem>>, vector<8x32xf32>
    %c0_1 = arith.constant 0 : index
    %c0_2 = arith.constant 0 : index
    %1 = vector.load %arg2[%c0_1, %c0_2] : memref<32x64xf32, #tpu.memory_space<vmem>>, vector<32x64xf32>
    %cst = arith.constant dense<0.000000e+00> : vector<8x64xf32>
    %2 = tpu.matmul %0, %1, %cst {dimension_numbers = #tpu.dot_dimension_numbers<[1], [0], [0], [1], [0, 0, 1, 1], [], []>} : vector<8x32xf32>, vector<32x64xf32>, vector<8x64xf32> -> vector<8x64xf32>
    %cst_3 = arith.constant 5.000000e-01 : f32
    %3 = vector.broadcast %cst_3 : f32 to vector<8x64xf32>
    %4 = arith.mulf %3, %2 : vector<8x64xf32>
    %cst_4 = arith.constant 0.707106769 : f32
    %5 = vector.broadcast %cst_4 : f32 to vector<8x64xf32>
    %6 = arith.mulf %2, %5 : vector<8x64xf32>
    %7 = math.erf %6 : vector<8x64xf32>
    %cst_5 = arith.constant 1.000000e+00 : f32
    %8 = vector.broadcast %cst_5 : f32 to vector<8x64xf32>
    %9 = arith.addf %8, %7 : vector<8x64xf32>
    %10 = arith.mulf %4, %9 : vector<8x64xf32>
    %c0_6 = arith.constant 0 : index
    %c0_7 = arith.constant 0 : index
    %11 = vector.load %arg5[%c0_6, %c0_7] : memref<1x64xf32, #tpu.memory_space<vmem>>, vector<1x64xf32>
    %c0_8 = arith.constant 0 : index
    %c0_9 = arith.constant 0 : index
    %12 = vector.load %arg6[%c0_8, %c0_9] : memref<1x64xf32, #tpu.memory_space<vmem>>, vector<1x64xf32>
    %cst_10 = arith.constant dense<0.000000e+00> : vector<8xf32>
    %13 = vector.multi_reduction <add>, %10, %cst_10 [1] : vector<8x64xf32> to vector<8xf32>
    %14 = vector.shape_cast %13 : vector<8xf32> to vector<8x1xf32>
    %cst_11 = arith.constant 6.400000e+01 : f32
    %15 = vector.broadcast %cst_11 : f32 to vector<8x1xf32>
    %16 = arith.divf %14, %15 : vector<8x1xf32>
    %17 = vector.broadcast %16 : vector<8x1xf32> to vector<8x64xf32>
    %18 = arith.subf %10, %17 : vector<8x64xf32>
    %19 = arith.mulf %18, %18 : vector<8x64xf32>
    %cst_12 = arith.constant dense<0.000000e+00> : vector<8xf32>
    %20 = vector.multi_reduction <add>, %19, %cst_12 [1] : vector<8x64xf32> to vector<8xf32>
    %21 = vector.shape_cast %20 : vector<8xf32> to vector<8x1xf32>
    %cst_13 = arith.constant 6.400000e+01 : f32
    %22 = vector.broadcast %cst_13 : f32 to vector<8x1xf32>
    %23 = arith.divf %21, %22 : vector<8x1xf32>
    %24 = vector.broadcast %16 : vector<8x1xf32> to vector<8x64xf32>
    %25 = arith.subf %10, %24 : vector<8x64xf32>
    %cst_14 = arith.constant 9.99999974E-6 : f32
    %26 = vector.broadcast %cst_14 : f32 to vector<8x1xf32>
    %27 = arith.addf %23, %26 : vector<8x1xf32>
    %28 = math.rsqrt %27 : vector<8x1xf32>
    %29 = vector.broadcast %28 : vector<8x1xf32> to vector<8x64xf32>
    %30 = arith.mulf %25, %29 : vector<8x64xf32>
    %31 = vector.broadcast %11 : vector<1x64xf32> to vector<8x64xf32>
    %32 = arith.mulf %30, %31 : vector<8x64xf32>
    %33 = vector.broadcast %12 : vector<1x64xf32> to vector<8x64xf32>
    %34 = arith.addf %32, %33 : vector<8x64xf32>
    %c0_15 = arith.constant 0 : index
    %c0_16 = arith.constant 0 : index
    %35 = vector.load %arg3[%c0_15, %c0_16] : memref<64x48xf32, #tpu.memory_space<vmem>>, vector<64x48xf32>
    %cst_17 = arith.constant dense<0.000000e+00> : vector<8x48xf32>
    %36 = tpu.matmul %34, %35, %cst_17 {dimension_numbers = #tpu.dot_dimension_numbers<[1], [0], [0], [1], [0, 0, 1, 1], [], []>} : vector<8x64xf32>, vector<64x48xf32>, vector<8x48xf32> -> vector<8x48xf32>
    %cst_18 = arith.constant 5.000000e-01 : f32
    %37 = vector.broadcast %cst_18 : f32 to vector<8x48xf32>
    %38 = arith.mulf %37, %36 : vector<8x48xf32>
    %cst_19 = arith.constant 0.707106769 : f32
    %39 = vector.broadcast %cst_19 : f32 to vector<8x48xf32>
    %40 = arith.mulf %36, %39 : vector<8x48xf32>
    %41 = math.erf %40 : vector<8x48xf32>
    %cst_20 = arith.constant 1.000000e+00 : f32
    %42 = vector.broadcast %cst_20 : f32 to vector<8x48xf32>
    %43 = arith.addf %42, %41 : vector<8x48xf32>
    %44 = arith.mulf %38, %43 : vector<8x48xf32>
    %c0_21 = arith.constant 0 : index
    %c0_22 = arith.constant 0 : index
    %45 = vector.load %arg7[%c0_21, %c0_22] : memref<1x48xf32, #tpu.memory_space<vmem>>, vector<1x48xf32>
    %c0_23 = arith.constant 0 : index
    %c0_24 = arith.constant 0 : index
    %46 = vector.load %arg8[%c0_23, %c0_24] : memref<1x48xf32, #tpu.memory_space<vmem>>, vector<1x48xf32>
    %cst_25 = arith.constant dense<0.000000e+00> : vector<8xf32>
    %47 = vector.multi_reduction <add>, %44, %cst_25 [1] : vector<8x48xf32> to vector<8xf32>
    %48 = vector.shape_cast %47 : vector<8xf32> to vector<8x1xf32>
    %cst_26 = arith.constant 4.800000e+01 : f32
    %49 = vector.broadcast %cst_26 : f32 to vector<8x1xf32>
    %50 = arith.divf %48, %49 : vector<8x1xf32>
    %51 = vector.broadcast %50 : vector<8x1xf32> to vector<8x48xf32>
    %52 = arith.subf %44, %51 : vector<8x48xf32>
    %53 = arith.mulf %52, %52 : vector<8x48xf32>
    %cst_27 = arith.constant dense<0.000000e+00> : vector<8xf32>
    %54 = vector.multi_reduction <add>, %53, %cst_27 [1] : vector<8x48xf32> to vector<8xf32>
    %55 = vector.shape_cast %54 : vector<8xf32> to vector<8x1xf32>
    %cst_28 = arith.constant 4.800000e+01 : f32
    %56 = vector.broadcast %cst_28 : f32 to vector<8x1xf32>
    %57 = arith.divf %55, %56 : vector<8x1xf32>
    %58 = vector.broadcast %50 : vector<8x1xf32> to vector<8x48xf32>
    %59 = arith.subf %44, %58 : vector<8x48xf32>
    %cst_29 = arith.constant 9.99999974E-6 : f32
    %60 = vector.broadcast %cst_29 : f32 to vector<8x1xf32>
    %61 = arith.addf %57, %60 : vector<8x1xf32>
    %62 = math.rsqrt %61 : vector<8x1xf32>
    %63 = vector.broadcast %62 : vector<8x1xf32> to vector<8x48xf32>
    %64 = arith.mulf %59, %63 : vector<8x48xf32>
    %65 = vector.broadcast %45 : vector<1x48xf32> to vector<8x48xf32>
    %66 = arith.mulf %64, %65 : vector<8x48xf32>
    %67 = vector.broadcast %46 : vector<1x48xf32> to vector<8x48xf32>
    %68 = arith.addf %66, %67 : vector<8x48xf32>
    %c0_30 = arith.constant 0 : index
    %c0_31 = arith.constant 0 : index
    %69 = vector.load %arg4[%c0_30, %c0_31] : memref<48x16xf32, #tpu.memory_space<vmem>>, vector<48x16xf32>
    %cst_32 = arith.constant dense<0.000000e+00> : vector<8x16xf32>
    %70 = tpu.matmul %68, %69, %cst_32 {dimension_numbers = #tpu.dot_dimension_numbers<[1], [0], [0], [1], [0, 0, 1, 1], [], []>} : vector<8x48xf32>, vector<48x16xf32>, vector<8x16xf32> -> vector<8x16xf32>
    %c0_33 = arith.constant 0 : index
    %c0_34 = arith.constant 0 : index
    %71 = vector.load %arg9[%c0_33, %c0_34] : memref<8x16xf32, #tpu.memory_space<vmem>>, vector<8x16xf32>
    tpu.vector_store %arg9[%c0_33, %c0_34], %70 {strides = array<i32>} : memref<8x16xf32, #tpu.memory_space<vmem>>, vector<8x16xf32>,
    return
  }
  func.func @transform_0(%arg0: i32) -> (i32, i32) {
    %c0_i32 = arith.constant 0 : i32
    %c0_i32_0 = arith.constant 0 : i32
    return %arg0, %c0_i32 : i32, i32
  }
  func.func @transform_1(%arg0: i32) -> (i32, i32) {
    %c0_i32 = arith.constant 0 : i32
    %c0_i32_0 = arith.constant 0 : i32
    %c0_i32_1 = arith.constant 0 : i32
    return %c0_i32, %c0_i32_0 : i32, i32
  }
  func.func @transform_2(%arg0: i32) -> (i32, i32) {
    %c0_i32 = arith.constant 0 : i32
    %c0_i32_0 = arith.constant 0 : i32
    %c0_i32_1 = arith.constant 0 : i32
    return %c0_i32, %c0_i32_0 : i32, i32
  }
  func.func @transform_3(%arg0: i32) -> (i32, i32) {
    %c0_i32 = arith.constant 0 : i32
    %c0_i32_0 = arith.constant 0 : i32
    %c0_i32_1 = arith.constant 0 : i32
    return %c0_i32, %c0_i32_0 : i32, i32
  }
  func.func @transform_4(%arg0: i32) -> (i32, i32) {
    %c0_i32 = arith.constant 0 : i32
    %c0_i32_0 = arith.constant 0 : i32
    %c0_i32_1 = arith.constant 0 : i32
    return %c0_i32, %c0_i32_0 : i32, i32
  }
  func.func @transform_5(%arg0: i32) -> (i32, i32) {
    %c0_i32 = arith.constant 0 : i32
    %c0_i32_0 = arith.constant 0 : i32
    %c0_i32_1 = arith.constant 0 : i32
    return %c0_i32, %c0_i32_0 : i32, i32
  }
  func.func @transform_6(%arg0: i32) -> (i32, i32) {
    %c0_i32 = arith.constant 0 : i32
    %c0_i32_0 = arith.constant 0 : i32
    %c0_i32_1 = arith.constant 0 : i32
    return %c0_i32, %c0_i32_0 : i32, i32
  }
  func.func @transform_7(%arg0: i32) -> (i32, i32) {
    %c0_i32 = arith.constant 0 : i32
    %c0_i32_0 = arith.constant 0 : i32
    %c0_i32_1 = arith.constant 0 : i32
    return %c0_i32, %c0_i32_0 : i32, i32
  }
  func.func @transform_8(%arg0: i32) -> (i32, i32) {
    %c0_i32 = arith.constant 0 : i32
    %c0_i32_0 = arith.constant 0 : i32
    return %arg0, %c0_i32 : i32, i32
  }
}

</mosaic_0001>

<bundles_post_ra>
// kernel: tpu_custom_call.1
= control target key start
LH: loop header
LB: loop body
LE: loop exit
PB: predicated region body
PF: predicated region fallthrough
CT: control target
= control target key end

     0   :  { %v463_v1 = vmov 0.0   ;;  %vm464_vm0 = vmmov 0   ;;  %s613_s0 = inlined_call_operand.vmem [shape: f32[8,32], index: 0, kind: input, shape index: {}]   ;;  %s614_s1 = inlined_call_operand.vmem [shape: f32[32,64], index: 1, kind: input, shape index: {}]   ;;  %s615_s2 = inlined_call_operand.vmem [shape: f32[64,48], index: 2, kind: input, shape index: {}]   ;;  %s616_s3 = inlined_call_operand.vmem [shape: f32[48,16], index: 3, kind: input, shape index: {}]   ;;  %s617_s4 = inlined_call_operand.vmem [shape: f32[1,64], index: 4, kind: input, shape index: {}]   ;;  %s618_s5 = inlined_call_operand.vmem [shape: f32[1,64], index: 5, kind: input, shape index: {}]   ;;  %s619_s6 = inlined_call_operand.vmem [shape: f32[1,48], index: 6, kind: input, shape index: {}]   ;;  %s620_s7 = inlined_call_operand.vmem [shape: f32[1,48], index: 7, kind: input, shape index: {}]   ;;  %s621_s8 = inlined_call_operand.hbm [shape: f32[8,16], index: 8, kind: output, shape index: {}]  }
   0x1   :  { %v34_v0 = vld [vmem:[%s614_s1 + $0x18] sm:$0xff]  ;;  %385 = vmatprep.subr.mxu0 %v463_v1  ;;  %v33_v2 = vld [vmem:[%s614_s1 + $0x10] sm:$0xff]  ;;  %393 = vmatprep.mubr.msk.f32.mxu0 %vm464_vm0, %v463_v1 }
   0x2   :  { %13 = vsyncpa [#allocation3], 0  ;;  %386 = vmatpush3.msra.mxu0 %v34_v0  ;;  %396 = vmatprep.subr.mxu1 %v463_v1  ;;  %v32_v3 = vld [vmem:[%s614_s1 + $0x8] sm:$0xff]  ;;  %v31_v4 = vld [vmem:[%s614_s1] sm:$0xff]  ;;  %vm35_vm1 = vcmask 261120   ;;  %vm116_vm2 = vcmask 523264  }
   0x3   :  { %387 = vmatprep.subr.mxu0 %v463_v1  ;;  %412 = vmatprep.mubr.msk.f32.mxu1 %vm464_vm0, %v463_v1  ;;  %v30_v5 = vld [vmem:[%s613_s0] sm:$0xff]  ;;  %v152_v19 = vld [vmem:[%s615_s2 + $0x38] sm:$0xff]  ;;  %v151_v20 = vld [vmem:[%s615_s2 + $0x30] sm:$0xff]  ;;  %vm233_vm3 = vcmask 392192   ;;  %vm341_vm4 = vcmask 130048  }
   0x4   :  { %388 = vmatpush3.msra.mxu0 %v33_v2  ;;  %397 = vmatpush3.msra.mxu1 %v152_v19  ;;  %v150_v21 = vld [vmem:[%s615_s2 + $0x28] sm:$0xff]  ;;  %v149_v22 = vld [vmem:[%s615_s2 + $0x20] sm:$0xff]  ;;  %v148_v23 = vld [vmem:[%s615_s2 + $0x18] sm:$0xff] }
   0x5   :  { %389 = vmatprep.subr.mxu0 %v463_v1  ;;  %398 = vmatprep.subr.mxu1 %v463_v1  ;;  %v147_v24 = vld [vmem:[%s615_s2 + $0x10] sm:$0xff]  ;;  %v146_v25 = vld [vmem:[%s615_s2 + $0x8] sm:$0xff]  ;;  %v145_v26 = vld [vmem:[%s615_s2] sm:$0xff] }
   0x6   :  { %390 = vmatpush3.msra.mxu0 %v32_v3  ;;  %399 = vmatpush3.msra.mxu1 %v151_v20  ;;  %v358_v31 = vld [vmem:[%s617_s4] ss:$0 sm:$0xff]  ;;  %v267_v49 = vld [vmem:[%s616_s3 + $0x28] sm:$0xff]  ;;  %v265_v51 = vld [vmem:[%s616_s3 + $0x18] sm:$0xff] }
   0x7   :  { %391 = vmatprep.subr.mxu0 %v463_v1  ;;  %400 = vmatprep.subr.mxu1 %v463_v1  ;;  %v359_v33 = vld [vmem:[%s618_s5] ss:$0 sm:$0xff]  ;;  %v264_v52 = vld [vmem:[%s616_s3 + $0x10] sm:$0xff]  ;;  %v263_v53 = vld [vmem:[%s616_s3 + $0x8] sm:$0xff] }
   0x8   :  { %392 = vmatpush3.msra.mxu0 %v31_v4  ;;  %401 = vmatpush3.msra.mxu1 %v150_v21  ;;  %v266_v50 = vld [vmem:[%s616_s3 + $0x20] sm:$0xff] }
   0x9   :  { %394 = vmatmul.mubr.msk.f32.vlgmr.msra.gmra.mxu0 %vm35_vm1, %v30_v5  ;;  %415 = vmatprep.subr.mxu0 %v463_v1  ;;  %v262_v54 = vld [vmem:[%s616_s3] sm:$0xff]  ;;  %s465_s3 = smov [#allocation2]  }
   0xa   :  { %427 = vmatprep.mubr.msk.f32.mxu0 %vm464_vm0, %v463_v1  ;;  %402 = vmatprep.subr.mxu1 %v463_v1  ;;  %v361_v59 = vld [vmem:[%s619_s6] ss:$0 sm:$0xff]  ;;  %s349_s22 = sshll.u32 %s465_s3, 4  ;;  %s350_s22 = int_to_ptr.vmem [resolvable:$true] %s349_s22 }
   0xb   :  { %403 = vmatpush3.msra.mxu1 %v149_v22  ;;  %416 = vmatpush3.msra.mxu0 %v267_v49  ;;  %v362_v61 = vld [vmem:[%s620_s7] ss:$0 sm:$0xff]  ;;  %s441_s23 = scalar_lea.vmem %s350_s22, 128  ;;  %p446_p1 = scmp.lt.s32.totalorder %s350_s22, %s350_s22 }
   0xc   :  { %404 = vmatprep.subr.mxu1 %v463_v1  ;;  %417 = vmatprep.subr.mxu0 %v463_v1  ;;  %p442_p0 = scmp.ne.s32.totalorder %s350_s22, %s441_s23  ;;  %p447_p2 = scmp.lt.s32.totalorder %s441_s23, %s441_s23 }
   0xd   :  { %405 = vmatpush3.msra.mxu1 %v148_v23  ;;  %418 = vmatpush3.msra.mxu0 %v266_v50 }
   0xe   :  { %406 = vmatprep.subr.mxu1 %v463_v1  ;;  %419 = vmatprep.subr.mxu0 %v463_v1  ;;  %p448_p3 = por %p447_p2, %p446_p1 }
   0xf   :  { %407 = vmatpush3.msra.mxu1 %v147_v24  ;;  %420 = vmatpush3.msra.mxu0 %v265_v51 }
  0x10   :  { %408 = vmatprep.subr.mxu1 %v463_v1  ;;  %421 = vmatprep.subr.mxu0 %v463_v1  ;;  %p449_p4 = pnand %p448_p3, %p442_p0 }
  0x11   :  { %409 = vmatpush3.msra.mxu1 %v146_v25  ;;  %422 = vmatpush3.msra.mxu0 %v264_v52 }
  0x12   :  { %410 = vmatprep.subr.mxu1 %v463_v1  ;;  %423 = vmatprep.subr.mxu0 %v463_v1 }
  0x13   :  { %411 = vmatpush3.msra.mxu1 %v145_v26  ;;  %424 = vmatpush3.msra.mxu0 %v263_v53 }
  0x14   :  { %425 = vmatprep.subr.mxu0 %v463_v1 }
  0x15   :  { %426 = vmatpush3.msra.mxu0 %v262_v54 }
  0xc9   :  { %v105_v6 = vpop.f32.mrf.mxu0 }
  0xca   :  { %v110_v7 = vmul.f32 0.70710677, %v105_v6  ;;  %v109_v10 = vmul.f32 0.5, %v105_v6 }
  0xcb   :  { %v395_v8 = vpop.f32.mrf.mxu0 }
  0xcc   :  { %433 = verf.f32 %v110_v7 }
  0xd9   :  { %v434_v9 = vpop.eup %433 }
  0xda   :  { %v112_v11 = vadd.f32 1.0, %v434_v9 }
  0xdc   :  { %v113_v12 = vmul.f32 %v112_v11, %v109_v10 }
  0xde   :  { %v117_v13 = vsel %vm116_vm2, %v113_v12, 0.0 }
  0xdf   :  { %118 = vadd.xlane.f32.xlu0 %v117_v13 }
 0x168   :  { %v119_v14 = vpop.xlane.xlu0 %118 }
 0x169   :  { %v121_v15 = vmul.f32 0.015625, %v119_v14 }
 0x16b   :  { %v122_v16 = vsub.f32 %v113_v12, %v121_v15 }
 0x16d   :  { %v123_v17 = vmul.f32 %v122_v16, %v122_v16 }
 0x16f   :  { %v124_v18 = vsel %vm116_vm2, %v123_v17, 0.0 }
 0x170   :  { %125 = vadd.xlane.f32.xlu0 %v124_v18 }
 0x1f9   :  { %v126_v27 = vpop.xlane.xlu0 %125 }
 0x1fa   :  { %v127_v28 = vmul.f32 0.015625, %v126_v27 }
 0x1fc   :  { %v128_v29 = vadd.f32 1e-05, %v127_v28 }
 0x1fe   :  { %435 = vrsqrt.f32 %v128_v29 }
 0x20b   :  { %v436_v30 = vpop.eup %435 }
 0x20c   :  { %v130_v32 = vmul.f32 %v436_v30, %v122_v16 }
 0x20e   :  { %v137_v34 = vmul.f32 %v358_v31, %v130_v32 }
 0x210   :  { %v144_v35 = vadd.f32 %v359_v33, %v137_v34 }
 0x212   :  { %413 = vmatmul.mubr.msk.f32.vlgmr.msra.gmra.mxu1 %vm116_vm2, %v144_v35 }
 0x2d2   :  { %v222_v36 = vpop.f32.mrf.mxu1 }
 0x2d3   :  { %v227_v37 = vmul.f32 0.70710677, %v222_v36  ;;  %v226_v40 = vmul.f32 0.5, %v222_v36 }
 0x2d4   :  { %v414_v38 = vpop.f32.mrf.mxu1 }
 0x2d5   :  { %437 = verf.f32 %v227_v37 }
 0x2e2   :  { %v438_v39 = vpop.eup %437 }
 0x2e3   :  { %v229_v41 = vadd.f32 1.0, %v438_v39 }
 0x2e5   :  { %v230_v42 = vmul.f32 %v229_v41, %v226_v40 }
 0x2e7   :  { %v234_v43 = vsel %vm233_vm3, %v230_v42, 0.0 }
 0x2e8   :  { %235 = vadd.xlane.f32.xlu1 %v234_v43 }
 0x371   :  { %v236_v44 = vpop.xlane.xlu1 %235 }
 0x372   :  { %v238_v45 = vmul.f32 0.020833334, %v236_v44 }
 0x374   :  { %v239_v46 = vsub.f32 %v230_v42, %v238_v45 }
 0x376   :  { %v240_v47 = vmul.f32 %v239_v46, %v239_v46 }
 0x378   :  { %v241_v48 = vsel %vm233_vm3, %v240_v47, 0.0 }
 0x379   :  { %242 = vadd.xlane.f32.xlu1 %v241_v48 }
 0x402   :  { %v243_v55 = vpop.xlane.xlu1 %242 }
 0x403   :  { %v244_v56 = vmul.f32 0.020833334, %v243_v55 }
 0x405   :  { %v245_v57 = vadd.f32 1e-05, %v244_v56 }
 0x407   :  { %439 = vrsqrt.f32 %v245_v57 }
 0x414   :  { %v440_v58 = vpop.eup %439 }
 0x415   :  { %v247_v60 = vmul.f32 %v440_v58, %v239_v46 }
 0x417   :  { %v254_v62 = vmul.f32 %v361_v59, %v247_v60 }
 0x419   :  { %v261_v63 = vadd.f32 %v362_v61, %v254_v62 }
 0x41b   :  { %428 = vmatmul.mubr.msk.f32.vlgmr.msra.gmra.mxu0 %vm233_vm3, %v261_v63 }
 0x4db   :  { %v337_v0 = vpop.f32.mrf.mxu0 }
 0x4dc   :  { %342 = vst.msk [vmem:[#allocation2] sm:$0xff] %vm341_vm4, %v337_v0 }
 0x4dd   :  { %v429_v1 = vpop.f32.mrf.mxu0 }
 0x4de   :  { %452 = shalt.err (!%p449_p4)
}
 0x4df   :  { %352 = dma.vmem_to_hbm [thread:$0]  %s350_s22, 128, %s621_s8, [#allocation3]  }
 0x4e0   :  { %461 = dma.done.wait [#allocation3], 128  }
 0x4e1   :  { %462 = vsyncadd [#allocation3], 4294967168 }
 0x4e2   :  { %356 = vsyncpa [#allocation3], 1 }

</bundles_post_ra>
